<compile_context>
chip_gen: v6e
topology: v6e:2x2x1
jax: 0.10.0
libtpu: 0.0.40
codegen_flags: <defaults>
</compile_context>

<pallas_src>
import functools

import numpy as np
import jax
import jax.numpy as jnp
from jax.experimental import pallas as pl
from jax.experimental.pallas import tpu as pltpu

_LANE = 128
_SUBLANE = 8


def _round_up(x, m):
    return ((x + m - 1) // m) * m


def _pad_gate_cols(mat, d, d_pad):
    """[rows, 4*d] -> [rows, 4*d_pad] with each gate's d columns placed at a
    lane-aligned offset g*d_pad (zero padding in between)."""
    rows = mat.shape[0]
    m = mat.reshape(rows, 4, d)
    m = jnp.pad(m, ((0, 0), (0, 0), (0, d_pad - d)))
    return m.reshape(rows, 4 * d_pad)


def lstm_kernel(xh_ref, c_ref, wu_ref, b_ref, h_out_ref, c_out_ref, *, d_pad):
    # One fused MXU matmul produces all four gate pre-activations (f32 accumulate).
    z = jnp.dot(xh_ref[...], wu_ref[...], preferred_element_type=jnp.float32)
    z = z + b_ref[...]

    D = d_pad  # lane-aligned per-gate width
    forget_g = jax.nn.sigmoid(z[:, 0 * D:1 * D])
    input_g = jax.nn.sigmoid(z[:, 1 * D:2 * D])
    output_g = jax.nn.sigmoid(z[:, 2 * D:3 * D])
    cell_g = jnp.tanh(z[:, 3 * D:4 * D])

    c_new = forget_g * c_ref[...] + input_g * cell_g
    # Module semantics: h = output * c (no tanh on the new cell state).
    h_new = output_g * c_new

    c_out_ref[...] = c_new.astype(c_out_ref.dtype)
    h_out_ref[...] = h_new.astype(h_out_ref.dtype)


def lstm_forward(x, hist, carousel, W, U, b, *, tile_n=None, compute_dtype=None):
    """Pallas wrapper. Returns (h, c) like the PyTorch module.

    x:        [N, input_dim]
    hist:     [N, D]
    carousel: [N, D]
    W:        [input_dim, 4*D]   (forget | input | output | cell stacked on lanes)
    U:        [D, 4*D]
    b:        [1, 4*D]
    """
    out_dtype = x.dtype
    N, in_dim = x.shape
    D = hist.shape[1]
    cdt = compute_dtype if compute_dtype is not None else x.dtype

    # Lane-align the per-gate width and pick a row tile (multiple of 8 sublanes).
    Dp = _round_up(D, _LANE)
    if tile_n is None:
        tile_n = min(512, _round_up(N, _SUBLANE))
    tile_n = max(_SUBLANE, _round_up(tile_n, _SUBLANE))
    Np = _round_up(N, tile_n)

    # Gate-wise lane padding of the parameters.
    Wp = _pad_gate_cols(W.astype(cdt), D, Dp)            # [in_dim, 4*Dp]
    Up = _pad_gate_cols(U.astype(cdt), D, Dp)            # [D,      4*Dp]
    bp = _pad_gate_cols(b.astype(jnp.float32), D, Dp)    # [1,      4*Dp]  (added post-accum in f32)

    # Fuse the two matmuls:  xh = [x | h]  ,  WU = [W ; U].
    xh = jnp.zeros((Np, in_dim + Dp), cdt)
    xh = xh.at[:N, :in_dim].set(x.astype(cdt))
    xh = xh.at[:N, in_dim:in_dim + D].set(hist.astype(cdt))

    WU = jnp.zeros((in_dim + Dp, 4 * Dp), cdt)
    WU = WU.at[:in_dim, :].set(Wp)
    WU = WU.at[in_dim:in_dim + D, :].set(Up)

    c_prev = jnp.zeros((Np, Dp), jnp.float32).at[:N, :D].set(carousel.astype(jnp.float32))

    # VMEM budget estimate -> explicit limit (capped for v7x's 64 MiB physical VMEM).
    itm = np.dtype(cdt).itemsize
    otm = np.dtype(out_dtype).itemsize
    est = (
        2 * (in_dim + Dp) * 4 * Dp * itm      # resident fused weights (worst-case double-buffered)
        + 2 * 4 * Dp * 4                      # bias (f32)
        + 2 * tile_n * (in_dim + Dp) * itm    # double-buffered xh tiles
        + 2 * tile_n * Dp * 4                 # double-buffered carousel tiles (f32)
        + 2 * 2 * tile_n * Dp * otm           # double-buffered h/c output tiles
        + tile_n * 4 * Dp * 4                 # z intermediate (f32)
    )
    vmem_limit = int(min(max(int(est * 1.5), 32 << 20), 64 << 20))

    kernel = functools.partial(lstm_kernel, d_pad=Dp)

    h_pad, c_pad = pl.pallas_call(
        kernel,
        out_shape=(jax.ShapeDtypeStruct((Np, Dp), out_dtype),
                   jax.ShapeDtypeStruct((Np, Dp), out_dtype)),
        grid=(Np // tile_n,),
        in_specs=[
            pl.BlockSpec((tile_n, in_dim + Dp), lambda i: (i, 0)),   # xh: streamed row tiles
            pl.BlockSpec((tile_n, Dp), lambda i: (i, 0)),            # carousel: streamed row tiles
            pl.BlockSpec((in_dim + Dp, 4 * Dp), lambda i: (0, 0)),   # WU: VMEM-resident
            pl.BlockSpec((1, 4 * Dp), lambda i: (0, 0)),             # b : VMEM-resident
        ],
        out_specs=(pl.BlockSpec((tile_n, Dp), lambda i: (i, 0)),
                   pl.BlockSpec((tile_n, Dp), lambda i: (i, 0))),
        compiler_params=pltpu.CompilerParams(
            dimension_semantics=("parallel",),
            vmem_limit_bytes=vmem_limit,
        ),
    )(xh, c_prev, WU, bp)

    # Strip row/lane padding back to the caller's layout.
    return h_pad[:N, :D], c_pad[:N, :D]
    # TODO(synk): if this cell is driven over a time sequence, hoist the T-loop
    # into the kernel (h/c in VMEM scratch, weights resident, input_output_aliases
    # for the final writeback) to avoid re-streaming W/U from HBM every step.


def reference_forward(x, hist, carousel, W, U, b):
    """Pure-JAX reference mirroring the PyTorch module semantics."""
    D = hist.shape[1]
    z = x @ W + hist @ U + b
    f = jax.nn.sigmoid(z[:, 0 * D:1 * D])
    i = jax.nn.sigmoid(z[:, 1 * D:2 * D])
    o = jax.nn.sigmoid(z[:, 2 * D:3 * D])
    g = jnp.tanh(z[:, 3 * D:4 * D])
    c = f * carousel + i * g
    h = o * c
    return h, c


if __name__ == "__main__":
    # Small shapes consistent with the module's forward:
    #   inputs   : [N, input_dim]
    #   hist     : [N, output_dim]
    #   carousel : [N, output_dim]
    N, input_dim, output_dim = 8, 16, 32
    key = jax.random.PRNGKey(0)
    kx, kh, kc, kw, ku, kb = jax.random.split(key, 6)

    x = jax.random.normal(kx, (N, input_dim), dtype=jnp.float32)
    hist = jax.random.normal(kh, (N, output_dim), dtype=jnp.float32)
    carousel = jax.random.normal(kc, (N, output_dim), dtype=jnp.float32)

    # Deterministic per-gate parameters (forget, input, output, cell),
    # stacked along the lane axis into W [in, 4D], U [D, 4D], b [1, 4D].
    scale = 0.1
    W_gates = scale * jax.random.normal(kw, (4, input_dim, output_dim), jnp.float32)
    U_gates = scale * jax.random.normal(ku, (4, output_dim, output_dim), jnp.float32)
    b_gates = scale * jax.random.normal(kb, (4, output_dim), jnp.float32)

    W = jnp.concatenate([W_gates[g] for g in range(4)], axis=1)           # [in, 4D]
    U = jnp.concatenate([U_gates[g] for g in range(4)], axis=1)           # [D, 4D]
    b = jnp.concatenate([b_gates[g] for g in range(4)], axis=0)[None, :]  # [1, 4D]

    h_ref, c_ref = reference_forward(x, hist, carousel, W, U, b)

    # f32 path — should match the reference tightly.
    h_out, c_out = lstm_forward(x, hist, carousel, W, U, b)
    jax.block_until_ready((h_out, c_out))
    assert jnp.allclose(h_out, h_ref, atol=1e-5, rtol=1e-5)
    assert jnp.allclose(c_out, c_ref, atol=1e-5, rtol=1e-5)

    # bf16 MXU path (f32 accumulation) — looser tolerance, exercises the
    # reduced-precision weight/activation option recommended for v6e/v7x.
    h_bf, c_bf = lstm_forward(x, hist, carousel, W, U, b,
                              compute_dtype=jnp.bfloat16)
    jax.block_until_ready((h_bf, c_bf))
    assert jnp.allclose(h_bf, h_ref, atol=7.5e-2, rtol=7.5e-2)
    assert jnp.allclose(c_bf, c_ref, atol=7.5e-2, rtol=7.5e-2)

    print("KERNEL_OK")
</pallas_src>

<mosaic_0001>
module attributes {stable_mosaic.version = 11 : i64} {
  func.func @lstm_kernel(%arg0: i32, %arg1: memref<8x144xf32, #tpu.memory_space<vmem>>, %arg2: memref<8x128xf32, #tpu.memory_space<vmem>>, %arg3: memref<144x512xf32, #tpu.memory_space<vmem>>, %arg4: memref<1x512xf32, #tpu.memory_space<vmem>>, %arg5: memref<8x128xf32, #tpu.memory_space<vmem>>, %arg6: memref<8x128xf32, #tpu.memory_space<vmem>>) attributes {dimension_semantics = [#tpu.dimension_semantics<parallel>], iteration_bounds = array<i64: 1>, scalar_prefetch = 0 : i64, scratch_operands = 0 : i64, tpu.core_type = #tpu.core_type<tc>, window_params = [{transform_indices = @transform_0, window_bounds = array<i64: 8, 144>}, {transform_indices = @transform_1, window_bounds = array<i64: 8, 128>}, {pipeline_mode = #tpu.pipeline_mode<synchronous>, transform_indices = @transform_2, window_bounds = array<i64: 144, 512>}, {pipeline_mode = #tpu.pipeline_mode<synchronous>, transform_indices = @transform_3, window_bounds = array<i64: 1, 512>}, {transform_indices = @transform_4, window_bounds = array<i64: 8, 128>}, {transform_indices = @transform_5, window_bounds = array<i64: 8, 128>}]} {
    %c0 = arith.constant 0 : index
    %c0_0 = arith.constant 0 : index
    %0 = vector.load %arg1[%c0, %c0_0] : memref<8x144xf32, #tpu.memory_space<vmem>>, vector<8x144xf32>
    %c0_1 = arith.constant 0 : index
    %c0_2 = arith.constant 0 : index
    %1 = vector.load %arg3[%c0_1, %c0_2] : memref<144x512xf32, #tpu.memory_space<vmem>>, vector<144x512xf32>
    %cst = arith.constant dense<0.000000e+00> : vector<8x512xf32>
    %2 = tpu.matmul %0, %1, %cst {dimension_numbers = #tpu.dot_dimension_numbers<[1], [0], [0], [1], [0, 0, 1, 1], [], []>} : vector<8x144xf32>, vector<144x512xf32>, vector<8x512xf32> -> vector<8x512xf32>
    %c0_3 = arith.constant 0 : index
    %c0_4 = arith.constant 0 : index
    %3 = vector.load %arg4[%c0_3, %c0_4] : memref<1x512xf32, #tpu.memory_space<vmem>>, vector<1x512xf32>
    %4 = vector.broadcast %3 : vector<1x512xf32> to vector<8x512xf32>
    %5 = arith.addf %2, %4 : vector<8x512xf32>
    %6 = vector.extract_strided_slice %5 {offsets = [0, 0], sizes = [8, 128], strides = [1, 1]} : vector<8x512xf32> to vector<8x128xf32>
    %7 = arith.negf %6 : vector<8x128xf32>
    %8 = math.exp %7 : vector<8x128xf32>
    %cst_5 = arith.constant 1.000000e+00 : f32
    %9 = vector.broadcast %cst_5 : f32 to vector<8x128xf32>
    %10 = arith.addf %9, %8 : vector<8x128xf32>
    %11 = arith.divf %9, %10 : vector<8x128xf32>
    %12 = vector.extract_strided_slice %5 {offsets = [0, 128], sizes = [8, 128], strides = [1, 1]} : vector<8x512xf32> to vector<8x128xf32>
    %13 = arith.negf %12 : vector<8x128xf32>
    %14 = math.exp %13 : vector<8x128xf32>
    %cst_6 = arith.constant 1.000000e+00 : f32
    %15 = vector.broadcast %cst_6 : f32 to vector<8x128xf32>
    %16 = arith.addf %15, %14 : vector<8x128xf32>
    %17 = arith.divf %15, %16 : vector<8x128xf32>
    %18 = vector.extract_strided_slice %5 {offsets = [0, 256], sizes = [8, 128], strides = [1, 1]} : vector<8x512xf32> to vector<8x128xf32>
    %19 = arith.negf %18 : vector<8x128xf32>
    %20 = math.exp %19 : vector<8x128xf32>
    %cst_7 = arith.constant 1.000000e+00 : f32
    %21 = vector.broadcast %cst_7 : f32 to vector<8x128xf32>
    %22 = arith.addf %21, %20 : vector<8x128xf32>
    %23 = arith.divf %21, %22 : vector<8x128xf32>
    %24 = vector.extract_strided_slice %5 {offsets = [0, 384], sizes = [8, 128], strides = [1, 1]} : vector<8x512xf32> to vector<8x128xf32>
    %25 = math.tanh %24 : vector<8x128xf32>
    %c0_8 = arith.constant 0 : index
    %c0_9 = arith.constant 0 : index
    %26 = vector.load %arg2[%c0_8, %c0_9] : memref<8x128xf32, #tpu.memory_space<vmem>>, vector<8x128xf32>
    %27 = arith.mulf %11, %26 : vector<8x128xf32>
    %28 = arith.mulf %17, %25 : vector<8x128xf32>
    %29 = arith.addf %27, %28 : vector<8x128xf32>
    %30 = arith.mulf %23, %29 : vector<8x128xf32>
    %c0_10 = arith.constant 0 : index
    %c0_11 = arith.constant 0 : index
    %31 = vector.load %arg6[%c0_10, %c0_11] : memref<8x128xf32, #tpu.memory_space<vmem>>, vector<8x128xf32>
    tpu.vector_store %arg6[%c0_10, %c0_11], %29 {strides = array<i32>} : memref<8x128xf32, #tpu.memory_space<vmem>>, vector<8x128xf32>,
    %c0_12 = arith.constant 0 : index
    %c0_13 = arith.constant 0 : index
    %32 = vector.load %arg5[%c0_12, %c0_13] : memref<8x128xf32, #tpu.memory_space<vmem>>, vector<8x128xf32>
    tpu.vector_store %arg5[%c0_12, %c0_13], %30 {strides = array<i32>} : memref<8x128xf32, #tpu.memory_space<vmem>>, vector<8x128xf32>,
    return
  }
  func.func @transform_0(%arg0: i32) -> (i32, i32) {
    %c0_i32 = arith.constant 0 : i32
    %c0_i32_0 = arith.constant 0 : i32
    return %arg0, %c0_i32 : i32, i32
  }
  func.func @transform_1(%arg0: i32) -> (i32, i32) {
    %c0_i32 = arith.constant 0 : i32
    %c0_i32_0 = arith.constant 0 : i32
    return %arg0, %c0_i32 : i32, i32
  }
  func.func @transform_2(%arg0: i32) -> (i32, i32) {
    %c0_i32 = arith.constant 0 : i32
    %c0_i32_0 = arith.constant 0 : i32
    %c0_i32_1 = arith.constant 0 : i32
    return %c0_i32, %c0_i32_0 : i32, i32
  }
  func.func @transform_3(%arg0: i32) -> (i32, i32) {
    %c0_i32 = arith.constant 0 : i32
    %c0_i32_0 = arith.constant 0 : i32
    %c0_i32_1 = arith.constant 0 : i32
    return %c0_i32, %c0_i32_0 : i32, i32
  }
  func.func @transform_4(%arg0: i32) -> (i32, i32) {
    %c0_i32 = arith.constant 0 : i32
    %c0_i32_0 = arith.constant 0 : i32
    return %arg0, %c0_i32 : i32, i32
  }
  func.func @transform_5(%arg0: i32) -> (i32, i32) {
    %c0_i32 = arith.constant 0 : i32
    %c0_i32_0 = arith.constant 0 : i32
    return %arg0, %c0_i32 : i32, i32
  }
}

</mosaic_0001>

<bundles_post_ra>
// kernel: tpu_custom_call.1
= control target key start
LH: loop header
LB: loop body
LE: loop exit
PB: predicated region body
PF: predicated region fallthrough
CT: control target
= control target key end

     0   :  { %11 = vsyncpa [#allocation3], 0  ;;  %s547_s0 = inlined_call_operand.hbm [shape: f32[8,144], index: 0, kind: input, shape index: {}]   ;;  %s548_s1 = inlined_call_operand.hbm [shape: f32[8,128], index: 1, kind: input, shape index: {}]   ;;  %s549_s2 = inlined_call_operand.hbm [shape: f32[144,512], index: 2, kind: input, shape index: {}]   ;;  %s550_s3 = inlined_call_operand.vmem [shape: f32[1,512], index: 3, kind: input, shape index: {}]   ;;  %s551_s4 = inlined_call_operand.hbm [shape: f32[8,128], index: 4, kind: output, shape index: {0}]   ;;  %s552_s5 = inlined_call_operand.hbm [shape: f32[8,128], index: 5, kind: output, shape index: {1}]  }
   0x1   :  { %12 = vsyncpa [#allocation6], 0 }
   0x2   :  { %13 = vsyncpa [#allocation4], 0 }
   0x3   :  { %14 = vsyncpa [#allocation10], 0  ;;  %s490_s18 = smov [#allocation5]   ;;  %s491_s20 = smov [#allocation2]  }
   0x4   :  { %s31_s19 = sshll.u32 %s490_s18, 4  ;;  %s21_s21 = sshll.u32 %s491_s20, 4  ;;  %s32_s19 = int_to_ptr.vmem [resolvable:$true] %s31_s19  ;;  %s22_s21 = int_to_ptr.vmem [resolvable:$true] %s21_s21 }
   0x5   :  { %s390_s22 = scalar_lea.vmem %s32_s19, 128  ;;  %p395_p1 = scmp.lt.s32.totalorder %s32_s19, %s32_s19 }
   0x6   :  { %p391_p0 = scmp.ne.s32.totalorder %s32_s19, %s390_s22  ;;  %p396_p2 = scmp.lt.s32.totalorder %s390_s22, %s390_s22 }
   0x8   :  { %p397_p3 = por %p396_p2, %p395_p1 }
   0xa   :  { %p398_p4 = pnand %p397_p3, %p391_p0 }
   0xc   :  { %401 = shalt.err (!%p398_p4)
}
   0xd   :  { %34 = dma.hbm_to_vmem [thread:$0]  %s548_s1, 128, %s32_s19, [#allocation6]  }
   0xe   :  { %s410_s25 = scalar_lea.vmem %s22_s21, 256  ;;  %p415_p6 = scmp.lt.s32.totalorder %s22_s21, %s22_s21 }
   0xf   :  { %p411_p5 = scmp.ne.s32.totalorder %s22_s21, %s410_s25  ;;  %p416_p7 = scmp.lt.s32.totalorder %s410_s25, %s410_s25 }
  0x11   :  { %p417_p8 = por %p416_p7, %p415_p6 }
  0x13   :  { %p418_p9 = pnand %p417_p8, %p411_p5 }
  0x15   :  { %421 = shalt.err (!%p418_p9)
}
  0x16   :  { %24 = dma.hbm_to_vmem [thread:$0]  %s547_s0, 256, %s22_s21, [#allocation3]  }
  0x17   :  { %s492_s28 = smov [#allocation7]  }
  0x18   :  { %s40_s29 = sshll.u32 %s492_s28, 4  ;;  %s41_s29 = int_to_ptr.vmem [resolvable:$true] %s40_s29 }
  0x19   :  { %s430_s30 = scalar_lea.vmem %s41_s29, 9216  ;;  %p435_p11 = scmp.lt.s32.totalorder %s41_s29, %s41_s29 }
  0x1a   :  { %p431_p10 = scmp.ne.s32.totalorder %s41_s29, %s430_s30  ;;  %p436_p12 = scmp.lt.s32.totalorder %s430_s30, %s430_s30 }
  0x1c   :  { %p437_p13 = por %p436_p12, %p435_p11 }
  0x1e   :  { %p438_p0 = pnand %p437_p13, %p431_p10 }
  0x20   :  { %441 = shalt.err (!%p438_p0)
}
  0x21   :  { %s493_s1 = smov 512   ;;  %s494_s6 = smov 32  }
  0x22   :  { %46 = dma.hbm_to_vmem [thread:$0]  %s549_s2, 9216, %s41_s29, [#allocation6], %s493_s1, %s493_s1, %s494_s6  }
  0x23   :  { %482 = dma.done.wait [#allocation3], 256  }
  0x24   :  { %483 = vsyncadd [#allocation3], 4294967040 }
  0x25   :  { %484 = dma.done.wait [#allocation6], 9344  }
  0x26   :  { %485 = vsyncadd [#allocation6], 4294957952  ;;  %v121_v0 = vld [vmem:[#allocation7 + $0x1e8] sm:$0xff]  ;;  %v120_v1 = vld [vmem:[#allocation7 + $0x1e0] sm:$0xff]  ;;  %vm154_vm0 = vcmask 130048   ;;  %s496_s10 = smov [#allocation8]  }
  0x27   :  { %v117_v2 = vld [vmem:[#allocation7 + $0x1c8] sm:$0xff]  ;;  %158 = vmatprep.subr.mxu0 %v121_v0  ;;  %v116_v3 = vld [vmem:[#allocation7 + $0x1c0] sm:$0xff]  ;;  %v123_v4 = vld [vmem:[#allocation7 + $0x1f8] sm:$0xff]  ;;  %s332_s11 = sshll.u32 %s496_s10, 4  ;;  %s333_s11 = int_to_ptr.vmem [resolvable:$true] %s332_s11 }
  0x28   :  { %159 = vmatpush1.msra.mxu0 %v120_v1  ;;  %v113_v5 = vld [vmem:[#allocation7 + $0x1a8] sm:$0xff]  ;;  %229 = vmatprep.subr.mxu1 %v123_v4  ;;  %v122_v6 = vld [vmem:[#allocation7 + $0x1f0] sm:$0xff]  ;;  %v112_v7 = vld [vmem:[#allocation7 + $0x1a0] sm:$0xff] }
  0x29   :  { %160 = vmatprep.subr.mxu0 %v117_v2  ;;  %230 = vmatpush1.msra.mxu1 %v122_v6  ;;  %v119_v8 = vld [vmem:[#allocation7 + $0x1d8] sm:$0xff]  ;;  %v118_v9 = vld [vmem:[#allocation7 + $0x1d0] sm:$0xff]  ;;  %v109_v10 = vld [vmem:[#allocation7 + $0x188] sm:$0xff] }
  0x2a   :  { %161 = vmatpush1.msra.mxu0 %v116_v3  ;;  %231 = vmatprep.subr.mxu1 %v119_v8  ;;  %v115_v11 = vld [vmem:[#allocation7 + $0x1b8] sm:$0xff]  ;;  %v108_v12 = vld [vmem:[#allocation7 + $0x180] sm:$0xff]  ;;  %v114_v13 = vld [vmem:[#allocation7 + $0x1b0] sm:$0xff] }
  0x2b   :  { %162 = vmatprep.subr.mxu0 %v113_v5  ;;  %232 = vmatpush1.msra.mxu1 %v118_v9  ;;  %v111_v14 = vld [vmem:[#allocation7 + $0x198] sm:$0xff]  ;;  %v105_v15 = vld [vmem:[#allocation7 + $0x168] sm:$0xff]  ;;  %v110_v16 = vld [vmem:[#allocation7 + $0x190] sm:$0xff] }
  0x2c   :  { %163 = vmatpush1.msra.mxu0 %v112_v7  ;;  %233 = vmatprep.subr.mxu1 %v115_v11  ;;  %v104_v17 = vld [vmem:[#allocation7 + $0x160] sm:$0xff]  ;;  %v107_v18 = vld [vmem:[#allocation7 + $0x178] sm:$0xff]  ;;  %v101_v19 = vld [vmem:[#allocation7 + $0x148] sm:$0xff] }
  0x2d   :  { %164 = vmatprep.subr.mxu0 %v109_v10  ;;  %234 = vmatpush1.msra.mxu1 %v114_v13  ;;  %v106_v20 = vld [vmem:[#allocation7 + $0x170] sm:$0xff]  ;;  %v100_v21 = vld [vmem:[#allocation7 + $0x140] sm:$0xff]  ;;  %v103_v22 = vld [vmem:[#allocation7 + $0x158] sm:$0xff]  ;;  %v134_v10 = vlaneseq }
  0x2e   :  { %165 = vmatpush1.msra.mxu0 %v108_v12  ;;  %235 = vmatprep.subr.mxu1 %v111_v14  ;;  %v97_v23 = vld [vmem:[#allocation7 + $0x128] sm:$0xff]  ;;  %v102_v24 = vld [vmem:[#allocation7 + $0x150] sm:$0xff]  ;;  %v96_v25 = vld [vmem:[#allocation7 + $0x120] sm:$0xff] }
  0x2f   :  { %166 = vmatprep.subr.mxu0 %v105_v15  ;;  %236 = vmatpush1.msra.mxu1 %v110_v16  ;;  %v99_v26 = vld [vmem:[#allocation7 + $0x138] sm:$0xff]  ;;  %v93_v27 = vld [vmem:[#allocation7 + $0x108] sm:$0xff]  ;;  %v98_v28 = vld [vmem:[#allocation7 + $0x130] sm:$0xff]  ;;  %v135_v11 = vshrl.u32 %v134_v10, 7 }
  0x30   :  { %167 = vmatpush1.msra.mxu0 %v104_v17  ;;  %237 = vmatprep.subr.mxu1 %v107_v18  ;;  %v92_v29 = vld [vmem:[#allocation7 + $0x100] sm:$0xff]  ;;  %v95_v30 = vld [vmem:[#allocation7 + $0x118] sm:$0xff]  ;;  %v89_v31 = vld [vmem:[#allocation7 + $0xe8] sm:$0xff] }
  0x31   :  { %168 = vmatprep.subr.mxu0 %v101_v19  ;;  %238 = vmatpush1.msra.mxu1 %v106_v20  ;;  %v94_v32 = vld [vmem:[#allocation7 + $0x110] sm:$0xff]  ;;  %v88_v33 = vld [vmem:[#allocation7 + $0xe0] sm:$0xff]  ;;  %v91_v34 = vld [vmem:[#allocation7 + $0xf8] sm:$0xff]  ;;  %v136_v12 = vsub.s32 0, %v135_v11  ;;  %v140_v14 = vsub.s32 1, %v135_v11  ;;  %v144_v15 = vsub.s32 2, %v135_v11 }
  0x32   :  { %169 = vmatpush1.msra.mxu0 %v100_v21  ;;  %239 = vmatprep.subr.mxu1 %v103_v22  ;;  %v85_v35 = vld [vmem:[#allocation7 + $0xc8] sm:$0xff]  ;;  %v90_v36 = vld [vmem:[#allocation7 + $0xf0] sm:$0xff]  ;;  %v84_v37 = vld [vmem:[#allocation7 + $0xc0] sm:$0xff] }
  0x33   :  { %170 = vmatprep.subr.mxu0 %v97_v23  ;;  %240 = vmatpush1.msra.mxu1 %v102_v24  ;;  %v87_v38 = vld [vmem:[#allocation7 + $0xd8] sm:$0xff]  ;;  %v81_v39 = vld [vmem:[#allocation7 + $0xa8] sm:$0xff]  ;;  %v86_v40 = vld [vmem:[#allocation7 + $0xd0] sm:$0xff] }
  0x34   :  { %171 = vmatpush1.msra.mxu0 %v96_v25  ;;  %241 = vmatprep.subr.mxu1 %v99_v26  ;;  %v80_v41 = vld [vmem:[#allocation7 + $0xa0] sm:$0xff]  ;;  %v83_v42 = vld [vmem:[#allocation7 + $0xb8] sm:$0xff]  ;;  %v77_v43 = vld [vmem:[#allocation7 + $0x88] sm:$0xff] }
  0x35   :  { %172 = vmatprep.subr.mxu0 %v93_v27  ;;  %242 = vmatpush1.msra.mxu1 %v98_v28  ;;  %v82_v44 = vld [vmem:[#allocation7 + $0xb0] sm:$0xff]  ;;  %v76_v45 = vld [vmem:[#allocation7 + $0x80] sm:$0xff]  ;;  %v79_v46 = vld [vmem:[#allocation7 + $0x98] sm:$0xff]  ;;  %v148_v28 = vsub.s32 3, %v135_v11 }
  0x36   :  { %173 = vmatpush1.msra.mxu0 %v92_v29  ;;  %243 = vmatprep.subr.mxu1 %v95_v30  ;;  %v73_v47 = vld [vmem:[#allocation7 + $0x68] sm:$0xff]  ;;  %v78_v48 = vld [vmem:[#allocation7 + $0x90] sm:$0xff]  ;;  %v72_v49 = vld [vmem:[#allocation7 + $0x60] sm:$0xff] }
  0x37   :  { %174 = vmatprep.subr.mxu0 %v89_v31  ;;  %244 = vmatpush1.msra.mxu1 %v94_v32  ;;  %v75_v50 = vld [vmem:[#allocation7 + $0x78] sm:$0xff]  ;;  %v69_v51 = vld [vmem:[#allocation7 + $0x48] sm:$0xff]  ;;  %v74_v52 = vld [vmem:[#allocation7 + $0x70] sm:$0xff] }
  0x38   :  { %175 = vmatpush1.msra.mxu0 %v88_v33  ;;  %245 = vmatprep.subr.mxu1 %v91_v34  ;;  %v68_v53 = vld [vmem:[#allocation7 + $0x40] sm:$0xff]  ;;  %v71_v54 = vld [vmem:[#allocation7 + $0x58] sm:$0xff]  ;;  %v65_v55 = vld [vmem:[#allocation7 + $0x28] sm:$0xff] }
  0x39   :  { %176 = vmatprep.subr.mxu0 %v85_v35  ;;  %246 = vmatpush1.msra.mxu1 %v90_v36  ;;  %v70_v56 = vld [vmem:[#allocation7 + $0x50] sm:$0xff]  ;;  %v64_v57 = vld [vmem:[#allocation7 + $0x20] sm:$0xff]  ;;  %v67_v58 = vld [vmem:[#allocation7 + $0x38] sm:$0xff] }
  0x3a   :  { %177 = vmatpush1.msra.mxu0 %v84_v37  ;;  %247 = vmatprep.subr.mxu1 %v87_v38  ;;  %v61_v59 = vld [vmem:[#allocation7 + $0x8] sm:$0xff]  ;;  %v66_v60 = vld [vmem:[#allocation7 + $0x30] sm:$0xff]  ;;  %v60_v61 = vld [vmem:[#allocation7] sm:$0xff] }
  0x3b   :  { %178 = vmatprep.subr.mxu0 %v81_v39  ;;  %248 = vmatpush1.msra.mxu1 %v86_v40  ;;  %v63_v62 = vld [vmem:[#allocation7 + $0x18] sm:$0xff]  ;;  %v129_v63 = vld [vmem:[#allocation7 + $0x228] sm:$0xff]  ;;  %v59_v0 = vld [vmem:[#allocation2 + $0x8] sm:$0xff] }
  0x3c   :  { %179 = vmatpush1.msra.mxu0 %v80_v41  ;;  %249 = vmatprep.subr.mxu1 %v83_v42  ;;  %v128_v1 = vld [vmem:[#allocation7 + $0x220] sm:$0xff]  ;;  %v62_v2 = vld [vmem:[#allocation7 + $0x10] sm:$0xff]  ;;  %v125_v3 = vld [vmem:[#allocation7 + $0x208] sm:$0xff] }
  0x3d   :  { %180 = vmatprep.subr.mxu0 %v77_v43  ;;  %250 = vmatpush1.msra.mxu1 %v82_v44  ;;  %v131_v4 = vld [vmem:[#allocation7 + $0x238] sm:$0xff]  ;;  %v124_v5 = vld [vmem:[#allocation7 + $0x200] sm:$0xff]  ;;  %v130_v6 = vld [vmem:[#allocation7 + $0x230] sm:$0xff] }
  0x3e   :  { %181 = vmatpush1.msra.mxu0 %v76_v45  ;;  %251 = vmatprep.subr.mxu1 %v79_v46  ;;  %v58_v7 = vld [vmem:[#allocation2] sm:$0xff]  ;;  %v127_v8 = vld [vmem:[#allocation7 + $0x218] sm:$0xff]  ;;  %v126_v9 = vld [vmem:[#allocation7 + $0x210] sm:$0xff] }
  0x3f   :  { %182 = vmatprep.subr.mxu0 %v73_v47  ;;  %252 = vmatpush1.msra.mxu1 %v78_v48  ;;  %v132_v13 = vld [vmem:[%s550_s3] sm:$0xf]  ;;  %v319_v39 = vld [vmem:[#allocation5] sm:$0xff]  ;;  %s495_s3 = smov [#allocation9]  }
  0x40   :  { %183 = vmatpush1.msra.mxu0 %v72_v49  ;;  %253 = vmatprep.subr.mxu1 %v75_v50  ;;  %v137_v16 = vrot.slane %v132_v13, %v136_v12  ;;  %v141_v17 = vrot.slane %v132_v13, %v140_v14  ;;  %v145_v18 = vrot.slane %v132_v13, %v144_v15  ;;  %s342_s9 = sshll.u32 %s495_s3, 4  ;;  %s343_s9 = int_to_ptr.vmem [resolvable:$true] %s342_s9 }
  0x41   :  { %184 = vmatprep.subr.mxu0 %v69_v51  ;;  %254 = vmatpush1.msra.mxu1 %v74_v52  ;;  %v149_v29 = vrot.slane %v132_v13, %v148_v28  ;;  %s442_s12 = scalar_lea.vmem %s343_s9, 128  ;;  %p447_p2 = scmp.lt.s32.totalorder %s343_s9, %s343_s9 }
  0x42   :  { %185 = vmatpush1.msra.mxu0 %v68_v53  ;;  %255 = vmatprep.subr.mxu1 %v71_v54  ;;  %p443_p1 = scmp.ne.s32.totalorder %s343_s9, %s442_s12  ;;  %p448_p3 = scmp.lt.s32.totalorder %s442_s12, %s442_s12 }
  0x43   :  { %186 = vmatprep.subr.mxu0 %v65_v55  ;;  %256 = vmatpush1.msra.mxu1 %v70_v56 }
  0x44   :  { %187 = vmatpush1.msra.mxu0 %v64_v57  ;;  %257 = vmatprep.subr.mxu1 %v67_v58  ;;  %p449_p4 = por %p448_p3, %p447_p2 }
  0x45   :  { %188 = vmatprep.subr.mxu0 %v61_v59  ;;  %258 = vmatpush1.msra.mxu1 %v66_v60 }
  0x46   :  { %189 = vmatpush1.msra.mxu0 %v60_v61  ;;  %259 = vmatprep.subr.mxu1 %v63_v62  ;;  %p450_p5 = pnand %p449_p4, %p443_p1 }
  0x47   :  { %218 = vmatprep.subr.mxu0 %v129_v63  ;;  %356 = vmatprep.mubr.msk.f32.mxu0 %vm154_vm0, %v59_v0 }
  0x48   :  { %219 = vmatpush2.msra.mxu0 %v128_v1  ;;  %260 = vmatpush1.msra.mxu1 %v62_v2 }
  0x49   :  { %220 = vmatprep.subr.mxu0 %v125_v3  ;;  %289 = vmatprep.subr.mxu1 %v131_v4 }
  0x4a   :  { %221 = vmatpush2.msra.mxu0 %v124_v5  ;;  %290 = vmatpush2.msra.mxu1 %v130_v6 }
  0x4b   :  { %223 = vmatmul.mubr.f32.vlgmr.msra.gmra.mxu0 %v58_v7  ;;  %291 = vmatprep.subr.mxu1 %v127_v8 }
  0x4c   :  { %292 = vmatpush2.msra.mxu1 %v126_v9  ;;  %357 = vmatprep.mubr.msk.f32.mxu1 %vm154_vm0, %v59_v0 }
  0x4d   :  { %294 = vmatmul.mubr.f32.vlgmr.msra.gmra.mxu1 %v58_v7 }
 0x10b   :  { %v224_v19 = vpop.f32.mrf.mxu0 }
 0x10c   :  { %v225_v20 = vadd.f32 %v224_v19, %v137_v16 }
 0x10d   :  { %v226_v21 = vpop.f32.mrf.mxu0  ;;  %v295_v22 = vpop.f32.mrf.mxu1 }
 0x10e   :  { %v358_v23 = vmul.f32 -1.442695, %v225_v20  ;;  %v227_v24 = vadd.f32 %v226_v21, %v141_v17  ;;  %v296_v25 = vadd.f32 %v295_v22, %v145_v18 }
 0x10f   :  { %v297_v30 = vpop.f32.mrf.mxu1 }
 0x110   :  { %368 = vpow2.f32 %v358_v23  ;;  %v359_v26 = vmul.f32 -1.442695, %v227_v24  ;;  %v360_v27 = vmul.f32 -1.442695, %v296_v25  ;;  %v298_v32 = vadd.f32 %v297_v30, %v149_v29 }
 0x112   :  { %370 = vpow2.f32 %v359_v26 }
 0x113   :  { %372 = vpow2.f32 %v360_v27 }
 0x11d   :  { %v369_v31 = vpop.eup %368 }
 0x11e   :  { %v303_v33 = vadd.f32 1.0, %v369_v31 }
 0x11f   :  { %v371_v34 = vpop.eup %370 }
 0x120   :  { %v373_v35 = vpop.eup %372  ;;  %374 = vrcp.f32 %v303_v33  ;;  %v309_v36 = vadd.f32 1.0, %v371_v34 }
 0x121   :  { %v315_v37 = vadd.f32 1.0, %v373_v35  ;;  %376 = vtanh.f32 %v298_v32 }
 0x122   :  { %378 = vrcp.f32 %v309_v36 }
 0x123   :  { %380 = vrcp.f32 %v315_v37 }
 0x12d   :  { %v375_v38 = vpop.eup %374 }
 0x12e   :  { %v377_v40 = vpop.eup %376  ;;  %v320_v42 = vmul.f32 %v375_v38, %v319_v39 }
 0x12f   :  { %v379_v41 = vpop.eup %378 }
 0x130   :  { %v321_v43 = vmul.f32 %v379_v41, %v377_v40  ;;  %v381_v44 = vpop.eup %380 }
 0x132   :  { %v322_v45 = vadd.f32 %v321_v43, %v320_v42 }
 0x134   :  { %v323_v46 = vmul.f32 %v381_v44, %v322_v45  ;;  %324 = vst [vmem:[#allocation9] sm:$0xff] %v322_v45 }
 0x135   :  { %453 = shalt.err (!%p450_p5)
}
 0x136   :  { %345 = dma.vmem_to_hbm [thread:$0]  %s343_s9, 128, %s552_s5, [#allocation10]   ;;  %325 = vst [vmem:[#allocation8] sm:$0xff] %v323_v46 }
 0x137   :  { %s462_s15 = scalar_lea.vmem %s333_s11, 128  ;;  %p467_p7 = scmp.lt.s32.totalorder %s333_s11, %s333_s11 }
 0x138   :  { %p463_p6 = scmp.ne.s32.totalorder %s333_s11, %s462_s15  ;;  %p468_p8 = scmp.lt.s32.totalorder %s462_s15, %s462_s15 }
 0x13a   :  { %p469_p9 = por %p468_p8, %p467_p7 }
 0x13c   :  { %p470_p10 = pnand %p469_p9, %p463_p6 }
 0x13e   :  { %473 = shalt.err (!%p470_p10)
}
 0x13f   :  { %335 = dma.vmem_to_hbm [thread:$0]  %s333_s11, 128, %s551_s4, [#allocation4]  }
 0x140   :  { %486 = dma.done.wait [#allocation4], 128  }
 0x141   :  { %487 = vsyncadd [#allocation4], 4294967168 }
 0x142   :  { %488 = dma.done.wait [#allocation10], 128  }
 0x143   :  { %489 = vsyncadd [#allocation10], 4294967168 }
 0x144   :  { %352 = vsyncpa [#allocation3], 1 }
 0x145   :  { %353 = vsyncpa [#allocation6], 1 }
 0x146   :  { %354 = vsyncpa [#allocation4], 1 }
 0x147   :  { %355 = vsyncpa [#allocation10], 1 }

</bundles_post_ra>
